<compile_context>
chip_gen: v7x
topology: tpu7x:2x2x1
jax: 0.10.0
libtpu: 0.0.40
codegen_flags: <defaults>
</compile_context>

<pallas_src>
import jax
import jax.numpy as jnp
from jax.experimental import pallas as pl
from jax.experimental.pallas import tpu as pltpu

# --- model hyper-parameters (deterministic, in-script) ---
INPUT_SIZE = 32
HIDDEN1 = 64
HIDDEN2 = 64
OUTPUT_SIZE = 64          # multiple of INPUT_SIZE -> residual case 1
MULT = OUTPUT_SIZE // INPUT_SIZE
BATCH = 2
SEQ = 8
ROW_TILE = 1024           # max rows per grid step


def _round_up(x, m):
    return ((x + m - 1) // m) * m


def ffnn_kernel(x_ref, w1_ref, b1_ref, w2_ref, b2_ref, w3_ref, b3_ref,
                wres_ref, o_ref):
    """3 matmuls + tanh + relu, residual folded in as a 4th (constant) matmul."""
    x = x_ref[...]                                    # (r_tile, F_in) f32

    # Linear 1 + Tanh   (Dropout(p=0.0) is identity)
    h1 = jnp.dot(x, w1_ref[...], preferred_element_type=jnp.float32) + b1_ref[...]
    h1 = jnp.tanh(h1)

    # Linear 2 + ReLU   (Dropout(p=0.0) is identity)
    h2 = jnp.dot(h1, w2_ref[...], preferred_element_type=jnp.float32) + b2_ref[...]
    h2 = jnp.maximum(h2, 0.0)

    # Linear 3 (output layer) + residual-as-matmul:
    #   identity = repeat(x, mult) along features  ==  x @ [I | I]
    out = jnp.dot(h2, w3_ref[...], preferred_element_type=jnp.float32)
    out = out + jnp.dot(x, wres_ref[...], preferred_element_type=jnp.float32)
    out = out + b3_ref[...]

    o_ref[...] = out


def ffnn_forward(x, params, *, row_tile=ROW_TILE):
    """x: (B, S, INPUT_SIZE) float32 -> (B, S, OUTPUT_SIZE) float32."""
    w1, b1, w2, b2, w3, b3 = params
    B, S, F = x.shape
    R = B * S
    x2 = x.reshape(R, F)

    # Balanced row tiling: even grid steps, at most 7 padded rows.
    n_steps = pl.cdiv(R, row_tile)
    r_tile = _round_up(pl.cdiv(R, n_steps), 8)
    R_pad = n_steps * r_tile
    if R_pad != R:
        x2 = jnp.pad(x2, ((0, R_pad - R), (0, 0)))

    # Constant residual weight: [I_32 | I_32 | ...]  (F_in, F_out)
    w_res = jnp.concatenate([jnp.eye(F, dtype=jnp.float32)] * MULT, axis=1)

    grid = (n_steps,)

    def resident(shape):
        # full-array block, same block index every grid step (stays in VMEM)
        return pl.BlockSpec(shape, lambda i: (0,) * len(shape))

    out2 = pl.pallas_call(
        ffnn_kernel,
        out_shape=jax.ShapeDtypeStruct((R_pad, OUTPUT_SIZE), jnp.float32),
        grid=grid,
        in_specs=[
            pl.BlockSpec((r_tile, F), lambda i: (i, 0)),    # x: row-tiled
            resident(w1.shape), resident(b1.shape),
            resident(w2.shape), resident(b2.shape),
            resident(w3.shape), resident(b3.shape),
            resident(w_res.shape),
        ],
        out_specs=pl.BlockSpec((r_tile, OUTPUT_SIZE), lambda i: (i, 0)),
        compiler_params=pltpu.CompilerParams(
            dimension_semantics=("parallel",)),
    )(x2, w1, b1, w2, b2, w3, b3, w_res)

    return out2[:R].reshape(B, S, OUTPUT_SIZE)


def init_params(key):
    """Deterministic init (torch.nn.Linear-like; weights stored transposed as (in, out))."""
    ks = jax.random.split(key, 6)

    def lin(kw, kb, fan_in, fan_out):
        bound = 1.0 / jnp.sqrt(fan_in)
        w = jax.random.uniform(kw, (fan_in, fan_out), jnp.float32, -bound, bound)
        b = jax.random.uniform(kb, (1, fan_out), jnp.float32, -bound, bound)
        return w, b

    w1, b1 = lin(ks[0], ks[1], INPUT_SIZE, HIDDEN1)
    w2, b2 = lin(ks[2], ks[3], HIDDEN1, HIDDEN2)
    w3, b3 = lin(ks[4], ks[5], HIDDEN2, OUTPUT_SIZE)
    return (w1, b1, w2, b2, w3, b3)


def ffnn_reference(x, params):
    """Pure-JAX reference of the same forward pass (correctness check)."""
    w1, b1, w2, b2, w3, b3 = params
    h1 = jnp.tanh(x @ w1 + b1[0])
    h2 = jnp.maximum(h1 @ w2 + b2[0], 0.0)
    out = h2 @ w3 + b3[0]
    identity = jnp.tile(x, (1, 1, MULT))
    return identity + out


if __name__ == "__main__":
    key = jax.random.PRNGKey(0)
    k_x, k_p, k_big = jax.random.split(key, 3)
    params = init_params(k_p)

    # Small shape consistent with the module's 3-D (B, S, F) input.
    x = jax.random.normal(k_x, (BATCH, SEQ, INPUT_SIZE), jnp.float32)
    out = jax.block_until_ready(ffnn_forward(x, params))
    ref = ffnn_reference(x, params)
    assert out.shape == (BATCH, SEQ, OUTPUT_SIZE)
    assert jnp.allclose(out, ref, atol=1e-5, rtol=1e-5)

    # Larger shape exercises the multi-step row grid (3 steps) and padding.
    xb = jax.random.normal(k_big, (4, 600, INPUT_SIZE), jnp.float32)
    outb = jax.block_until_ready(ffnn_forward(xb, params))
    refb = ffnn_reference(xb, params)
    assert outb.shape == (4, 600, OUTPUT_SIZE)
    assert jnp.allclose(outb, refb, atol=1e-5, rtol=1e-5)

    print("KERNEL_OK")
</pallas_src>

<mosaic_0001>
module attributes {stable_mosaic.version = 11 : i64} {
  func.func @ffnn_kernel(%arg0: i32, %arg1: memref<16x32xf32, #tpu.memory_space<vmem>>, %arg2: memref<32x64xf32, #tpu.memory_space<vmem>>, %arg3: memref<1x64xf32, #tpu.memory_space<vmem>>, %arg4: memref<64x64xf32, #tpu.memory_space<vmem>>, %arg5: memref<1x64xf32, #tpu.memory_space<vmem>>, %arg6: memref<64x64xf32, #tpu.memory_space<vmem>>, %arg7: memref<1x64xf32, #tpu.memory_space<vmem>>, %arg8: memref<32x64xf32, #tpu.memory_space<vmem>>, %arg9: memref<16x64xf32, #tpu.memory_space<vmem>>) attributes {dimension_semantics = [#tpu.dimension_semantics<parallel>], iteration_bounds = array<i64: 1>, scalar_prefetch = 0 : i64, scratch_operands = 0 : i64, tpu.core_type = #tpu.core_type<tc>, window_params = [{transform_indices = @transform_0, window_bounds = array<i64: 16, 32>}, {pipeline_mode = #tpu.pipeline_mode<synchronous>, transform_indices = @transform_1, window_bounds = array<i64: 32, 64>}, {pipeline_mode = #tpu.pipeline_mode<synchronous>, transform_indices = @transform_2, window_bounds = array<i64: 1, 64>}, {pipeline_mode = #tpu.pipeline_mode<synchronous>, transform_indices = @transform_3, window_bounds = array<i64: 64, 64>}, {pipeline_mode = #tpu.pipeline_mode<synchronous>, transform_indices = @transform_4, window_bounds = array<i64: 1, 64>}, {pipeline_mode = #tpu.pipeline_mode<synchronous>, transform_indices = @transform_5, window_bounds = array<i64: 64, 64>}, {pipeline_mode = #tpu.pipeline_mode<synchronous>, transform_indices = @transform_6, window_bounds = array<i64: 1, 64>}, {pipeline_mode = #tpu.pipeline_mode<synchronous>, transform_indices = @transform_7, window_bounds = array<i64: 32, 64>}, {transform_indices = @transform_8, window_bounds = array<i64: 16, 64>}]} {
    %c0 = arith.constant 0 : index
    %c0_0 = arith.constant 0 : index
    %0 = vector.load %arg1[%c0, %c0_0] : memref<16x32xf32, #tpu.memory_space<vmem>>, vector<16x32xf32>
    %c0_1 = arith.constant 0 : index
    %c0_2 = arith.constant 0 : index
    %1 = vector.load %arg2[%c0_1, %c0_2] : memref<32x64xf32, #tpu.memory_space<vmem>>, vector<32x64xf32>
    %cst = arith.constant dense<0.000000e+00> : vector<16x64xf32>
    %2 = tpu.matmul %0, %1, %cst {dimension_numbers = #tpu.dot_dimension_numbers<[1], [0], [0], [1], [0, 0, 1, 1], [], []>} : vector<16x32xf32>, vector<32x64xf32>, vector<16x64xf32> -> vector<16x64xf32>
    %c0_3 = arith.constant 0 : index
    %c0_4 = arith.constant 0 : index
    %3 = vector.load %arg3[%c0_3, %c0_4] : memref<1x64xf32, #tpu.memory_space<vmem>>, vector<1x64xf32>
    %4 = vector.broadcast %3 : vector<1x64xf32> to vector<16x64xf32>
    %5 = arith.addf %2, %4 : vector<16x64xf32>
    %6 = math.tanh %5 : vector<16x64xf32>
    %c0_5 = arith.constant 0 : index
    %c0_6 = arith.constant 0 : index
    %7 = vector.load %arg4[%c0_5, %c0_6] : memref<64x64xf32, #tpu.memory_space<vmem>>, vector<64x64xf32>
    %cst_7 = arith.constant dense<0.000000e+00> : vector<16x64xf32>
    %8 = tpu.matmul %6, %7, %cst_7 {dimension_numbers = #tpu.dot_dimension_numbers<[1], [0], [0], [1], [0, 0, 1, 1], [], []>} : vector<16x64xf32>, vector<64x64xf32>, vector<16x64xf32> -> vector<16x64xf32>
    %c0_8 = arith.constant 0 : index
    %c0_9 = arith.constant 0 : index
    %9 = vector.load %arg5[%c0_8, %c0_9] : memref<1x64xf32, #tpu.memory_space<vmem>>, vector<1x64xf32>
    %10 = vector.broadcast %9 : vector<1x64xf32> to vector<16x64xf32>
    %11 = arith.addf %8, %10 : vector<16x64xf32>
    %cst_10 = arith.constant 0.000000e+00 : f32
    %12 = vector.broadcast %cst_10 : f32 to vector<16x64xf32>
    %13 = arith.maximumf %11, %12 : vector<16x64xf32>
    %c0_11 = arith.constant 0 : index
    %c0_12 = arith.constant 0 : index
    %14 = vector.load %arg6[%c0_11, %c0_12] : memref<64x64xf32, #tpu.memory_space<vmem>>, vector<64x64xf32>
    %cst_13 = arith.constant dense<0.000000e+00> : vector<16x64xf32>
    %15 = tpu.matmul %13, %14, %cst_13 {dimension_numbers = #tpu.dot_dimension_numbers<[1], [0], [0], [1], [0, 0, 1, 1], [], []>} : vector<16x64xf32>, vector<64x64xf32>, vector<16x64xf32> -> vector<16x64xf32>
    %c0_14 = arith.constant 0 : index
    %c0_15 = arith.constant 0 : index
    %16 = vector.load %arg8[%c0_14, %c0_15] : memref<32x64xf32, #tpu.memory_space<vmem>>, vector<32x64xf32>
    %cst_16 = arith.constant dense<0.000000e+00> : vector<16x64xf32>
    %17 = tpu.matmul %0, %16, %cst_16 {dimension_numbers = #tpu.dot_dimension_numbers<[1], [0], [0], [1], [0, 0, 1, 1], [], []>} : vector<16x32xf32>, vector<32x64xf32>, vector<16x64xf32> -> vector<16x64xf32>
    %18 = arith.addf %15, %17 : vector<16x64xf32>
    %c0_17 = arith.constant 0 : index
    %c0_18 = arith.constant 0 : index
    %19 = vector.load %arg7[%c0_17, %c0_18] : memref<1x64xf32, #tpu.memory_space<vmem>>, vector<1x64xf32>
    %20 = vector.broadcast %19 : vector<1x64xf32> to vector<16x64xf32>
    %21 = arith.addf %18, %20 : vector<16x64xf32>
    %c0_19 = arith.constant 0 : index
    %c0_20 = arith.constant 0 : index
    %22 = vector.load %arg9[%c0_19, %c0_20] : memref<16x64xf32, #tpu.memory_space<vmem>>, vector<16x64xf32>
    tpu.vector_store %arg9[%c0_19, %c0_20], %21 {strides = array<i32>} : memref<16x64xf32, #tpu.memory_space<vmem>>, vector<16x64xf32>,
    return
  }
  func.func @transform_0(%arg0: i32) -> (i32, i32) {
    %c0_i32 = arith.constant 0 : i32
    %c0_i32_0 = arith.constant 0 : i32
    return %arg0, %c0_i32 : i32, i32
  }
  func.func @transform_1(%arg0: i32) -> (i32, i32) {
    %c0_i32 = arith.constant 0 : i32
    %c0_i32_0 = arith.constant 0 : i32
    %c0_i32_1 = arith.constant 0 : i32
    return %c0_i32, %c0_i32_0 : i32, i32
  }
  func.func @transform_2(%arg0: i32) -> (i32, i32) {
    %c0_i32 = arith.constant 0 : i32
    %c0_i32_0 = arith.constant 0 : i32
    %c0_i32_1 = arith.constant 0 : i32
    return %c0_i32, %c0_i32_0 : i32, i32
  }
  func.func @transform_3(%arg0: i32) -> (i32, i32) {
    %c0_i32 = arith.constant 0 : i32
    %c0_i32_0 = arith.constant 0 : i32
    %c0_i32_1 = arith.constant 0 : i32
    return %c0_i32, %c0_i32_0 : i32, i32
  }
  func.func @transform_4(%arg0: i32) -> (i32, i32) {
    %c0_i32 = arith.constant 0 : i32
    %c0_i32_0 = arith.constant 0 : i32
    %c0_i32_1 = arith.constant 0 : i32
    return %c0_i32, %c0_i32_0 : i32, i32
  }
  func.func @transform_5(%arg0: i32) -> (i32, i32) {
    %c0_i32 = arith.constant 0 : i32
    %c0_i32_0 = arith.constant 0 : i32
    %c0_i32_1 = arith.constant 0 : i32
    return %c0_i32, %c0_i32_0 : i32, i32
  }
  func.func @transform_6(%arg0: i32) -> (i32, i32) {
    %c0_i32 = arith.constant 0 : i32
    %c0_i32_0 = arith.constant 0 : i32
    %c0_i32_1 = arith.constant 0 : i32
    return %c0_i32, %c0_i32_0 : i32, i32
  }
  func.func @transform_7(%arg0: i32) -> (i32, i32) {
    %c0_i32 = arith.constant 0 : i32
    %c0_i32_0 = arith.constant 0 : i32
    %c0_i32_1 = arith.constant 0 : i32
    return %c0_i32, %c0_i32_0 : i32, i32
  }
  func.func @transform_8(%arg0: i32) -> (i32, i32) {
    %c0_i32 = arith.constant 0 : i32
    %c0_i32_0 = arith.constant 0 : i32
    return %arg0, %c0_i32 : i32, i32
  }
}

</mosaic_0001>

<bundles_post_ra>
// kernel: tpu_custom_call.1
= control target key start
LH: loop header
LB: loop body
LE: loop exit
PB: predicated region body
PF: predicated region fallthrough
CT: control target
= control target key end

     0   :  { %13 = vsyncpa [#allocation3], 0  ;;  %s973_s0 = inlined_call_operand.hbm [shape: f32[16,32], index: 0, kind: input, shape index: {}]   ;;  %s974_s1 = inlined_call_operand.hbm [shape: f32[32,64], index: 1, kind: input, shape index: {}]   ;;  %s975_s2 = inlined_call_operand.vmem [shape: f32[1,64], index: 2, kind: input, shape index: {}]   ;;  %s976_s3 = inlined_call_operand.hbm [shape: f32[64,64], index: 3, kind: input, shape index: {}]   ;;  %s977_s4 = inlined_call_operand.vmem [shape: f32[1,64], index: 4, kind: input, shape index: {}]   ;;  %s978_s5 = inlined_call_operand.hbm [shape: f32[64,64], index: 5, kind: input, shape index: {}]   ;;  %s979_s6 = inlined_call_operand.vmem [shape: f32[1,64], index: 6, kind: input, shape index: {}]   ;;  %s980_s7 = inlined_call_operand.hbm [shape: f32[32,64], index: 7, kind: input, shape index: {}]   ;;  %s981_s8 = inlined_call_operand.hbm [shape: f32[16,64], index: 8, kind: output, shape index: {}]  }
   0x1   :  { %14 = vsyncpa [#allocation6], 0 }
   0x2   :  { %15 = vsyncpa [#allocation9], 0 }
   0x3   :  { %16 = vsyncpa [#allocation4], 0  ;;  %s797_s27 = smov [#allocation5]   ;;  %s798_s29 = smov [#allocation8]  }
   0x4   :  { %s34_s28 = sshll.u32 %s797_s27, 4  ;;  %s62_s30 = sshll.u32 %s798_s29, 4  ;;  %s35_s28 = int_to_ptr.vmem [resolvable:$true] %s34_s28  ;;  %s850_s30 = int_to_ptr.vmem [resolvable:$true] %s62_s30 }
   0x5   :  { %s657_s11 = scalar_lea.hbm %s974_s1, 512 }
   0x6   :  { %p658_p0 = scmp.ne.s32.totalorder %s974_s1, %s657_s11  ;;  %p661_p1 = scmp.lt.u32.totalorder %s657_s11, %s974_s1 }
   0x8   :  { %p663_p2 = pnand %p661_p1, %p658_p0 }
   0xa   :  { %666 = shalt.err (!%p663_p2)
}
   0xb   :  { %s667_s16 = scalar_lea.vmem %s35_s28, 512  ;;  %p672_p4 = scmp.lt.s32.totalorder %s35_s28, %s35_s28 }
   0xc   :  { %p668_p3 = scmp.ne.s32.totalorder %s35_s28, %s667_s16  ;;  %p673_p5 = scmp.lt.s32.totalorder %s667_s16, %s667_s16 }
   0xe   :  { %p674_p6 = por %p673_p5, %p672_p4 }
  0x10   :  { %p675_p7 = pnand %p674_p6, %p668_p3 }
  0x12   :  { %678 = shalt.err (!%p675_p7)
}
  0x13   :  { %s799_s17 = smov 128   ;;  %s800_s18 = smov 8  }
  0x14   :  { %40 = dma.hbm_to_vmem [thread:$0]  %s974_s1, 512, %s35_s28, [#allocation6], %s799_s17, %s799_s17, %s800_s18  }
  0x15   :  { %s679_s23 = scalar_lea.hbm %s978_s5, 1024 }
  0x16   :  { %p680_p8 = scmp.ne.s32.totalorder %s978_s5, %s679_s23  ;;  %p683_p9 = scmp.lt.u32.totalorder %s679_s23, %s978_s5 }
  0x18   :  { %p685_p10 = pnand %p683_p9, %p680_p8 }
  0x1a   :  { %688 = shalt.err (!%p685_p10)
}
  0x1b   :  { %s689_s29 = scalar_lea.vmem %s850_s30, 1024  ;;  %p694_p12 = scmp.lt.s32.totalorder %s850_s30, %s850_s30 }
  0x1c   :  { %p690_p11 = scmp.ne.s32.totalorder %s850_s30, %s689_s29  ;;  %p695_p13 = scmp.lt.s32.totalorder %s689_s29, %s689_s29 }
  0x1e   :  { %p696_p0 = por %p695_p13, %p694_p12 }
  0x20   :  { %p697_p1 = pnand %p696_p0, %p690_p11 }
  0x22   :  { %700 = shalt.err (!%p697_p1)
}
  0x23   :  { %68 = dma.hbm_to_vmem [thread:$0]  %s978_s5, 1024, %s850_s30, [#allocation9], %s799_s17, %s799_s17, %s800_s18  }
  0x24   :  { %s801_s9 = smov [#allocation2]   ;;  %s802_s11 = smov [#allocation7]  }
  0x25   :  { %s22_s10 = sshll.u32 %s801_s9, 4  ;;  %s48_s12 = sshll.u32 %s802_s11, 4  ;;  %s23_s10 = int_to_ptr.vmem [resolvable:$true] %s22_s10  ;;  %s887_s12 = int_to_ptr.vmem [resolvable:$true] %s48_s12 }
  0x26   :  { %s701_s15 = scalar_lea.hbm %s973_s0, 256 }
  0x27   :  { %p702_p2 = scmp.ne.s32.totalorder %s973_s0, %s701_s15  ;;  %p705_p3 = scmp.lt.u32.totalorder %s701_s15, %s973_s0 }
  0x29   :  { %p707_p4 = pnand %p705_p3, %p702_p2 }
  0x2b   :  { %710 = shalt.err (!%p707_p4)
}
  0x2c   :  { %s711_s5 = scalar_lea.vmem %s23_s10, 256  ;;  %p716_p6 = scmp.lt.s32.totalorder %s23_s10, %s23_s10 }
  0x2d   :  { %p712_p5 = scmp.ne.s32.totalorder %s23_s10, %s711_s5  ;;  %p717_p7 = scmp.lt.s32.totalorder %s711_s5, %s711_s5 }
  0x2f   :  { %p718_p8 = por %p717_p7, %p716_p6 }
  0x31   :  { %p719_p9 = pnand %p718_p8, %p712_p5 }
  0x33   :  { %722 = shalt.err (!%p719_p9)
}
  0x34   :  { %28 = dma.hbm_to_vmem [thread:$0]  %s973_s0, 256, %s23_s10, [#allocation3], %s799_s17, %s799_s17, %s800_s18  }
  0x35   :  { %s723_s25 = scalar_lea.hbm %s976_s3, 1024 }
  0x36   :  { %p724_p10 = scmp.ne.s32.totalorder %s976_s3, %s723_s25  ;;  %p727_p11 = scmp.lt.u32.totalorder %s723_s25, %s976_s3 }
  0x38   :  { %p729_p12 = pnand %p727_p11, %p724_p10 }
  0x3a   :  { %732 = shalt.err (!%p729_p12)
}
  0x3b   :  { %s733_s28 = scalar_lea.vmem %s887_s12, 1024  ;;  %p738_p0 = scmp.lt.s32.totalorder %s887_s12, %s887_s12 }
  0x3c   :  { %p734_p13 = scmp.ne.s32.totalorder %s887_s12, %s733_s28  ;;  %p739_p1 = scmp.lt.s32.totalorder %s733_s28, %s733_s28 }
  0x3e   :  { %p740_p2 = por %p739_p1, %p738_p0 }
  0x40   :  { %p741_p3 = pnand %p740_p2, %p734_p13 }
  0x42   :  { %744 = shalt.err (!%p741_p3)
}
  0x43   :  { %54 = dma.hbm_to_vmem [thread:$0]  %s976_s3, 1024, %s887_s12, [#allocation6], %s799_s17, %s799_s17, %s800_s18  }
  0x44   :  { %s803_s10 = smov [#allocation10]   ;;  %s745_s15 = scalar_lea.hbm %s980_s7, 512 }
  0x45   :  { %s76_s11 = sshll.u32 %s803_s10, 4  ;;  %p746_p4 = scmp.ne.s32.totalorder %s980_s7, %s745_s15  ;;  %s77_s11 = int_to_ptr.vmem [resolvable:$true] %s76_s11 }
  0x46   :  { %p749_p5 = scmp.lt.u32.totalorder %s745_s15, %s980_s7 }
  0x48   :  { %p751_p6 = pnand %p749_p5, %p746_p4 }
  0x4a   :  { %754 = shalt.err (!%p751_p6)
}
  0x4b   :  { %s755_s5 = scalar_lea.vmem %s77_s11, 512  ;;  %p760_p8 = scmp.lt.s32.totalorder %s77_s11, %s77_s11 }
  0x4c   :  { %p756_p7 = scmp.ne.s32.totalorder %s77_s11, %s755_s5  ;;  %p761_p9 = scmp.lt.s32.totalorder %s755_s5, %s755_s5 }
  0x4e   :  { %p762_p10 = por %p761_p9, %p760_p8 }
  0x50   :  { %p763_p11 = pnand %p762_p10, %p756_p7 }
  0x52   :  { %766 = shalt.err (!%p763_p11)
}
  0x53   :  { %82 = dma.hbm_to_vmem [thread:$0]  %s980_s7, 512, %s77_s11, [#allocation9], %s799_s17, %s799_s17, %s800_s18  }
  0x54   :  { %789 = dma.done.wait [#allocation3], 256  }
  0x55   :  { %790 = vsyncadd [#allocation3], 4294967040 }
  0x56   :  { %791 = dma.done.wait [#allocation6], 1536  }
  0x57   :  { %792 = vsyncadd [#allocation6], 4294965760 }
  0x58   :  { %793 = dma.done.wait [#allocation9], 1536  }
  0x59   :  { %794 = vsyncadd [#allocation9], 4294965760  ;;  %vm111_vm0 = vcmask 261120   ;;  %v100_v0 = vld [vmem:[#allocation5] sm:$0xff]  ;;  %v101_v1 = vld [vmem:[#allocation5 + $0x8] sm:$0xff]  ;;  %vm210_vm1 = vcmask 523264  }
  0x5a   :  { %v102_v2 = vld [vmem:[#allocation5 + $0x10] sm:$0xff]  ;;  %v595_v3 = vpack.c.bf16 %v101_v1, %v100_v0  ;;  %v103_v4 = vld [vmem:[#allocation5 + $0x18] sm:$0xff]  ;;  %v195_v8 = vld [vmem:[#allocation7] sm:$0xff]  ;;  %s804_s25 = smov [#allocation11]  }
  0x5b   :  { %v98_v5 = vld [vmem:[#allocation2] sm:$0xff]  ;;  %v599_v6 = vpack.c.bf16 %v103_v4, %v102_v2  ;;  %v99_v7 = vld [vmem:[#allocation2 + $0x8] sm:$0xff]  ;;  %v196_v9 = vld [vmem:[#allocation7 + $0x8] sm:$0xff]  ;;  %s478_s26 = sshll.u32 %s804_s25, 4  ;;  %s479_s26 = int_to_ptr.vmem [resolvable:$true] %s478_s26 }
  0x5c   :  { %543 = vmatprep.mubr.msk.f32.mxu1 %vm111_vm0, %v98_v5  ;;  %573 = vmatprep.mubr.msk.f32.mxu0 %vm111_vm0, %v98_v5  ;;  %v603_v10 = vpack.c.bf16 %v196_v9, %v195_v8  ;;  %v197_v11 = vld [vmem:[#allocation7 + $0x10] sm:$0xff]  ;;  %v198_v12 = vld [vmem:[#allocation7 + $0x18] sm:$0xff]  ;;  %v199_v14 = vld [vmem:[#allocation7 + $0x20] sm:$0xff]  ;;  %p772_p13 = scmp.lt.s32.totalorder %s479_s26, %s479_s26 }
  0x5d   :  { %596 = vmatprep.subr.bf16.mxu1 %v595_v3  ;;  %v607_v13 = vpack.c.bf16 %v198_v12, %v197_v11  ;;  %v200_v15 = vld [vmem:[#allocation7 + $0x28] sm:$0xff]  ;;  %v201_v16 = vld [vmem:[#allocation7 + $0x30] sm:$0xff]  ;;  %v202_v18 = vld [vmem:[#allocation7 + $0x38] sm:$0xff] }
  0x5e   :  { %598 = vmatpush3.bf16.msra.mxu1 %v595_v3  ;;  %v611_v17 = vpack.c.bf16 %v200_v15, %v199_v14  ;;  %v615_v19 = vpack.c.bf16 %v202_v18, %v201_v16  ;;  %v302_v20 = vld [vmem:[#allocation10] sm:$0xff]  ;;  %v303_v21 = vld [vmem:[#allocation10 + $0x8] sm:$0xff]  ;;  %v304_v22 = vld [vmem:[#allocation10 + $0x10] sm:$0xff] }
  0x5f   :  { %600 = vmatprep.subr.bf16.mxu1 %v599_v6  ;;  %v619_v23 = vpack.c.bf16 %v303_v21, %v302_v20  ;;  %v305_v24 = vld [vmem:[#allocation10 + $0x18] sm:$0xff]  ;;  %v294_v26 = vld [vmem:[#allocation8] sm:$0xff]  ;;  %v295_v27 = vld [vmem:[#allocation8 + $0x8] sm:$0xff] }
  0x60   :  { %v623_v25 = vpack.c.bf16 %v305_v24, %v304_v22  ;;  %v627_v28 = vpack.c.bf16 %v295_v27, %v294_v26  ;;  %v296_v29 = vld [vmem:[#allocation8 + $0x10] sm:$0xff]  ;;  %v297_v30 = vld [vmem:[#allocation8 + $0x18] sm:$0xff]  ;;  %v298_v32 = vld [vmem:[#allocation8 + $0x20] sm:$0xff] }
  0x61   :  { %620 = vmatprep.subr.bf16.mxu0 %v619_v23  ;;  %v631_v31 = vpack.c.bf16 %v297_v30, %v296_v29  ;;  %v299_v33 = vld [vmem:[#allocation8 + $0x28] sm:$0xff]  ;;  %v492_v35 = vld [vmem:[%s975_s2] ss:$0 sm:$0xff]  ;;  %v301_v43 = vld [vmem:[#allocation8 + $0x38] sm:$0xff] }
  0x62   :  { %602 = vmatpush3.bf16.msra.mxu1 %v599_v6  ;;  %622 = vmatpush3.bf16.msra.mxu0 %v619_v23  ;;  %v635_v34 = vpack.c.bf16 %v299_v33, %v298_v32  ;;  %v300_v42 = vld [vmem:[#allocation8 + $0x30] sm:$0xff] }
  0x63   :  { %604 = vmatprep.subr.bf16.mxu1 %v603_v10  ;;  %624 = vmatprep.subr.bf16.mxu0 %v623_v25  ;;  %v639_v44 = vpack.c.bf16 %v301_v43, %v300_v42  ;;  %v495_v45 = vld [vmem:[%s977_s4] ss:$0 sm:$0xff]  ;;  %s767_s4 = scalar_lea.vmem %s479_s26, 256 }
  0x64   :  { %v502_v52 = vld [vmem:[%s979_s6] ss:$0 sm:$0xff]  ;;  %p768_p12 = scmp.ne.s32.totalorder %s479_s26, %s767_s4  ;;  %p773_p0 = scmp.lt.s32.totalorder %s767_s4, %s767_s4 }
  0x65   :  { %544 = vmatmul.mubr.msk.f32.vlgmr.msra.gmra.mrb[0].mxu1 %vm111_vm0, %v99_v7 }
  0x66   :  { %606 = vmatpush3.bf16.msra.mxu1 %v603_v10  ;;  %626 = vmatpush3.bf16.msra.mxu0 %v623_v25  ;;  %p774_p1 = por %p773_p0, %p772_p13 }
  0x67   :  { %608 = vmatprep.subr.bf16.mxu1 %v607_v13  ;;  %628 = vmatprep.subr.bf16.mxu0 %v627_v28 }
  0x68   :  { %p775_p2 = pnand %p774_p1, %p768_p12 }
  0x69   :  { %574 = vmatmul.mubr.msk.f32.vlgmr.msra.gmra.mrb[0].mxu0 %vm111_vm0, %v99_v7 }
  0x6a   :  { %610 = vmatpush3.bf16.msra.mxu1 %v607_v13  ;;  %630 = vmatpush3.bf16.msra.mxu0 %v627_v28 }
  0x6b   :  { %612 = vmatprep.subr.bf16.mxu1 %v611_v17  ;;  %632 = vmatprep.subr.bf16.mxu0 %v631_v31 }
  0x6e   :  { %614 = vmatpush3.bf16.msra.mxu1 %v611_v17  ;;  %634 = vmatpush3.bf16.msra.mxu0 %v631_v31 }
  0x6f   :  { %616 = vmatprep.subr.bf16.mxu1 %v615_v19  ;;  %636 = vmatprep.subr.bf16.mxu0 %v635_v34 }
  0x72   :  { %618 = vmatpush3.bf16.msra.mxu1 %v615_v19  ;;  %638 = vmatpush3.bf16.msra.mxu0 %v635_v34 }
  0x73   :  { %640 = vmatprep.subr.bf16.mxu0 %v639_v44 }
  0x76   :  { %642 = vmatpush3.bf16.msra.mxu0 %v639_v44 }
 0x138   :  { %v545_v36 = vpop.f32.mrb[0].mxu1 }
 0x139   :  { %v190_v37 = vadd.f32 %v545_v36, %v492_v35  ;;  %v184_v38 = vpop.f32.mrb[1].mxu1 }
 0x13a   :  { %v185_v39 = vadd.f32 %v492_v35, %v184_v38 }
 0x13c   :  { %653 = vtanh.f32 %v185_v39 }
 0x13d   :  { %655 = vtanh.f32 %v190_v37 }
 0x146   :  { %v654_v40 = vpop.eup %653 }
 0x147   :  { %v656_v41 = vpop.eup %655  ;;  %562 = vmatprep.mubr.msk.f32.mxu1 %vm210_vm1, %v654_v40 }
 0x148   :  { %563 = vmatmul.mubr.msk.f32.vlgmr.msra.gmra.mrb[2].mxu1 %vm210_vm1, %v656_v41 }
 0x21b   :  { %v564_v46 = vpop.f32.mrb[2].mxu1 }
 0x21c   :  { %v289_v47 = vadd.f32 %v564_v46, %v495_v45  ;;  %v283_v48 = vpop.f32.mrb[3].mxu1 }
 0x21d   :  { %v284_v49 = vadd.f32 %v495_v45, %v283_v48 }
 0x21e   :  { %v293_v51 = vmax.f32 %v289_v47, 0.0 }
 0x21f   :  { %v292_v50 = vmax.f32 %v284_v49, 0.0 }
 0x221   :  { %592 = vmatprep.mubr.msk.f32.mxu0 %vm210_vm1, %v292_v50 }
 0x222   :  { %593 = vmatmul.mubr.msk.f32.vlgmr.msra.gmra.mrb[0].mxu0 %vm210_vm1, %v293_v51 }
 0x2f5   :  { %v594_v53 = vpop.f32.mrb[0].mxu0 }
 0x2f6   :  { %v470_v54 = vadd.f32 %v594_v53, %v502_v52  ;;  %v453_v55 = vpop.f32.mrb[1].mxu0 }
 0x2f7   :  { %v469_v56 = vadd.f32 %v502_v52, %v453_v55 }
 0x2f8   :  { %472 = vst.msk [vmem:[#allocation11 + $0x8] sm:$0xff] %vm210_vm1, %v470_v54 }
 0x2f9   :  { %471 = vst.msk [vmem:[#allocation11] sm:$0xff] %vm210_vm1, %v469_v56 }
 0x2fa   :  { %778 = shalt.err (!%p775_p2)
}
 0x2fb   :  { %s779_s29 = scalar_lea.hbm %s981_s8, 256 }
 0x2fc   :  { %p780_p3 = scmp.ne.s32.totalorder %s981_s8, %s779_s29  ;;  %p783_p4 = scmp.lt.u32.totalorder %s779_s29, %s981_s8 }
 0x2fe   :  { %p785_p5 = pnand %p783_p4, %p780_p3 }
 0x300   :  { %788 = shalt.err (!%p785_p5)
}
 0x301   :  { %484 = dma.vmem_to_hbm [thread:$0]  %s479_s26, 256, %s981_s8, [#allocation4], %s799_s17, %s799_s17, %s800_s18  }
 0x302   :  { %795 = dma.done.wait [#allocation4], 256  }
 0x303   :  { %796 = vsyncadd [#allocation4], 4294967040 }
 0x304   :  { %488 = vsyncpa [#allocation3], 1 }
 0x305   :  { %489 = vsyncpa [#allocation6], 1 }
 0x306   :  { %490 = vsyncpa [#allocation9], 1 }
 0x307   :  { %491 = vsyncpa [#allocation4], 1 }

</bundles_post_ra>
